<compile_context>
chip_gen: v7x
topology: tpu7x:2x2x1
jax: 0.10.0
libtpu: 0.0.40
codegen_flags: <defaults>
</compile_context>

<pallas_src>
import jax
import jax.numpy as jnp
from jax.experimental import pallas as pl
from jax.experimental.pallas import tpu as pltpu

_LANE = 128


def _partial_sums_kernel(a_ref, b_ref, out_ref):
    """Per-tile partial sums of a*a, b*b, a*b, reduced over the sublane axis."""
    a = a_ref[...].astype(jnp.float32)
    b = b_ref[...].astype(jnp.float32)
    # Three lane-wise partial rows, written straight into the (1, 3, 128) block.
    out_ref[:, 0:1, :] = jnp.sum(a * a, axis=0, keepdims=True)[None]
    out_ref[:, 1:2, :] = jnp.sum(b * b, axis=0, keepdims=True)[None]
    out_ref[:, 2:3, :] = jnp.sum(a * b, axis=0, keepdims=True)[None]


def l2norm_loss(first, second, *, tile_rows=8192):
    """Pallas implementation of L2Norm.forward(first, second)."""
    n_total = first.size
    assert second.size == n_total, "first and second must have same #elements"

    a_flat = first.reshape(-1)
    b_flat = second.reshape(-1)

    # Minimum sublane multiple for the (packed) input dtype: 8 for 32-bit,
    # 16 for bf16/fp16, 32 for 8-bit.
    itemsize = min(jnp.dtype(a_flat.dtype).itemsize,
                   jnp.dtype(b_flat.dtype).itemsize)
    sub = 8 * max(1, 4 // max(1, itemsize))

    m_rows = n_total // _LANE                 # full 128-lane rows available
    m_main = (m_rows // sub) * sub            # rows coverable by aligned tiles

    saa = jnp.float32(0.0)
    sbb = jnp.float32(0.0)
    sab = jnp.float32(0.0)
    covered_elems = 0

    if m_main > 0:
        # --- choose tile height / block count (all static Python) ----------
        max_tr = max(sub, (tile_rows // sub) * sub)
        # >= 2 blocks whenever possible so v7x megacore can shard the sweep.
        nb = max(2 if m_main >= 2 * sub else 1, pl.cdiv(m_main, max_tr))
        tr = min(max_tr, max(sub, ((m_main // nb) // sub) * sub))
        num_blocks = m_main // tr
        covered_rows = num_blocks * tr
        covered_elems = covered_rows * _LANE

        # --- zero-copy slab for 128-aligned sizes --------------------------
        head_elems = m_rows * _LANE
        if head_elems != n_total:
            # Rare ragged (<128-elem) lane tail: the reshape below needs a
            # contiguous m_rows*128 buffer, so this prefix slice does copy.
            # TODO(synk): zero-copy ragged path via memory_space=pl.ANY + manual DMA.
            a_head = a_flat[:head_elems]
            b_head = b_flat[:head_elems]
        else:
            a_head, b_head = a_flat, b_flat           # free bitcast reshape below
        a2 = a_head.reshape(m_rows, _LANE)
        b2 = b_head.reshape(m_rows, _LANE)

        tile_spec = pl.BlockSpec((tr, _LANE), lambda i: (i, 0))

        partials = pl.pallas_call(
            _partial_sums_kernel,
            out_shape=jax.ShapeDtypeStruct((num_blocks, 3, _LANE), jnp.float32),
            grid_spec=pltpu.PrefetchScalarGridSpec(
                num_scalar_prefetch=0,
                grid=(num_blocks,),
                in_specs=[tile_spec, tile_spec],
                out_specs=pl.BlockSpec((1, 3, _LANE), lambda i: (i, 0, 0)),
            ),
            compiler_params=pltpu.CompilerParams(
                dimension_semantics=("parallel",),
                # ~16 MiB of double-buffered f32 input at tr=8192; raise the
                # scoped limit so v5e's 16 MiB default doesn't force small tiles
                # while staying well under v7x's 64 MiB physical VMEM.
                vmem_limit_bytes=40 << 20,
            ),
        )(a2, b2)

        sums = jnp.sum(partials, axis=(0, 2))         # (3,)
        saa, sbb, sab = sums[0], sums[1], sums[2]

    if covered_elems != n_total:
        # Small remainder (uncovered rows + <128-elem lane tail): plain jnp
        # reduction over just that slice (reads only the tail region).
        ta = a_flat[covered_elems:].astype(jnp.float32)
        tb = b_flat[covered_elems:].astype(jnp.float32)
        saa = saa + jnp.sum(ta * ta)
        sbb = sbb + jnp.sum(tb * tb)
        sab = sab + jnp.sum(ta * tb)

    # mean((a/||a|| - b/||b||)^2) == (2 - 2*<a,b> / (||a||*||b||)) / N
    return (2.0 - 2.0 * sab / jnp.sqrt(saa * sbb)) / n_total


def _reference(first, second):
    fn = first / jnp.linalg.norm(first.reshape(-1))
    sn = second / jnp.linalg.norm(second.reshape(-1))
    return jnp.mean((fn - sn) ** 2)


if __name__ == "__main__":
    key = jax.random.PRNGKey(0)
    k1, k2 = jax.random.split(key)
    # NCHW example shapes, consistent with a conv-feature loss use-case.
    first = jax.random.normal(k1, (2, 4, 16, 16), dtype=jnp.float32)
    second = jax.random.normal(k2, (2, 4, 16, 16), dtype=jnp.float32)

    loss = l2norm_loss(first, second)
    jax.block_until_ready(loss)

    ref = _reference(first, second)
    assert jnp.allclose(loss, ref, rtol=1e-5, atol=1e-6), (loss, ref)
    print("KERNEL_OK")
</pallas_src>

<mosaic_0001>
module attributes {stable_mosaic.version = 11 : i64} {
  func.func @_partial_sums_kernel(%arg0: i32, %arg1: memref<8x128xf32, #tpu.memory_space<vmem>>, %arg2: memref<8x128xf32, #tpu.memory_space<vmem>>, %arg3: memref<1x3x128xf32, #tpu.memory_space<vmem>>) attributes {dimension_semantics = [#tpu.dimension_semantics<parallel>], iteration_bounds = array<i64: 2>, scalar_prefetch = 0 : i64, scratch_operands = 0 : i64, tpu.core_type = #tpu.core_type<tc>, window_params = [{transform_indices = @transform_0, window_bounds = array<i64: 8, 128>}, {transform_indices = @transform_1, window_bounds = array<i64: 8, 128>}, {transform_indices = @transform_2, window_bounds = array<i64: 1, 3, 128>}]} {
    %c0 = arith.constant 0 : index
    %c0_0 = arith.constant 0 : index
    %0 = vector.load %arg1[%c0, %c0_0] : memref<8x128xf32, #tpu.memory_space<vmem>>, vector<8x128xf32>
    %c0_1 = arith.constant 0 : index
    %c0_2 = arith.constant 0 : index
    %1 = vector.load %arg2[%c0_1, %c0_2] : memref<8x128xf32, #tpu.memory_space<vmem>>, vector<8x128xf32>
    %2 = arith.mulf %0, %0 : vector<8x128xf32>
    %cst = arith.constant dense<0.000000e+00> : vector<128xf32>
    %3 = vector.multi_reduction <add>, %2, %cst [0] : vector<8x128xf32> to vector<128xf32>
    %4 = vector.shape_cast %3 : vector<128xf32> to vector<1x128xf32>
    %5 = vector.shape_cast %4 : vector<1x128xf32> to vector<1x1x128xf32>
    %c0_3 = arith.constant 0 : index
    %c0_4 = arith.constant 0 : index
    %c0_5 = arith.constant 0 : index
    %6 = vector.load %arg3[%c0_3, %c0_4, %c0_5] : memref<1x3x128xf32, #tpu.memory_space<vmem>>, vector<1x1x128xf32>
    tpu.vector_store %arg3[%c0_3, %c0_4, %c0_5], %5 {strides = array<i32>} : memref<1x3x128xf32, #tpu.memory_space<vmem>>, vector<1x1x128xf32>,
    %7 = arith.mulf %1, %1 : vector<8x128xf32>
    %cst_6 = arith.constant dense<0.000000e+00> : vector<128xf32>
    %8 = vector.multi_reduction <add>, %7, %cst_6 [0] : vector<8x128xf32> to vector<128xf32>
    %9 = vector.shape_cast %8 : vector<128xf32> to vector<1x128xf32>
    %10 = vector.shape_cast %9 : vector<1x128xf32> to vector<1x1x128xf32>
    %c0_7 = arith.constant 0 : index
    %c1 = arith.constant 1 : index
    %c0_8 = arith.constant 0 : index
    %11 = vector.load %arg3[%c0_7, %c1, %c0_8] : memref<1x3x128xf32, #tpu.memory_space<vmem>>, vector<1x1x128xf32>
    tpu.vector_store %arg3[%c0_7, %c1, %c0_8], %10 {strides = array<i32>} : memref<1x3x128xf32, #tpu.memory_space<vmem>>, vector<1x1x128xf32>,
    %12 = arith.mulf %0, %1 : vector<8x128xf32>
    %cst_9 = arith.constant dense<0.000000e+00> : vector<128xf32>
    %13 = vector.multi_reduction <add>, %12, %cst_9 [0] : vector<8x128xf32> to vector<128xf32>
    %14 = vector.shape_cast %13 : vector<128xf32> to vector<1x128xf32>
    %15 = vector.shape_cast %14 : vector<1x128xf32> to vector<1x1x128xf32>
    %c0_10 = arith.constant 0 : index
    %c2 = arith.constant 2 : index
    %c0_11 = arith.constant 0 : index
    %16 = vector.load %arg3[%c0_10, %c2, %c0_11] : memref<1x3x128xf32, #tpu.memory_space<vmem>>, vector<1x1x128xf32>
    tpu.vector_store %arg3[%c0_10, %c2, %c0_11], %15 {strides = array<i32>} : memref<1x3x128xf32, #tpu.memory_space<vmem>>, vector<1x1x128xf32>,
    return
  }
  func.func @transform_0(%arg0: i32) -> (i32, i32) {
    %c0_i32 = arith.constant 0 : i32
    %c0_i32_0 = arith.constant 0 : i32
    return %arg0, %c0_i32 : i32, i32
  }
  func.func @transform_1(%arg0: i32) -> (i32, i32) {
    %c0_i32 = arith.constant 0 : i32
    %c0_i32_0 = arith.constant 0 : i32
    return %arg0, %c0_i32 : i32, i32
  }
  func.func @transform_2(%arg0: i32) -> (i32, i32, i32) {
    %c0_i32 = arith.constant 0 : i32
    %c0_i32_0 = arith.constant 0 : i32
    %c0_i32_1 = arith.constant 0 : i32
    return %arg0, %c0_i32, %c0_i32_0 : i32, i32, i32
  }
}

</mosaic_0001>

<bundles_post_ra>
// kernel: tpu_custom_call.1
= control target key start
LH: loop header
LB: loop body
LE: loop exit
PB: predicated region body
PF: predicated region fallthrough
CT: control target
= control target key end

     0   :  { %7 = vsyncpa [#allocation3], 0  ;;  %s638_s0 = inlined_call_operand.hbm [shape: f32[16,128], index: 0, kind: input, shape index: {}]   ;;  %s639_s1 = inlined_call_operand.hbm [shape: f32[16,128], index: 1, kind: input, shape index: {}]   ;;  %s640_s2 = inlined_call_operand.vmem [shape: f32[2,3,128], index: 2, kind: output, shape index: {}]  }
   0x1   :  { %9 = vsyncpa [#allocation3 + $0x1], 0 }
   0x2   :  { %10 = vsyncpa [#allocation5], 0 }
   0x3   :  { %12 = vsyncpa [#allocation5 + $0x1], 0  ;;  %s484_s9 = smov 0   ;;  %s486_s10 = smov 0  }
   0x4   :  { %s488_s11 = smov 0   ;;  %s490_s12 = smov 0  }
   0x5 LB: > { %s503_s13 = sadd.s32 4294967295, %s465_s12   ;;  %s506_s14 = sadd.s32 1, %s465_s12   ;;  %s465_s12 = sphi %s490_s12, %s652_s12   ;;  %s461_s11 = sphi %s488_s11, %s651_s11   ;;  %s457_s10 = sphi %s486_s10, %s650_s10   ;;  %s453_s9 = sphi %s484_s9, %s649_s9  }
   0x6   : > { %s22_s15 = ssub.s32 %s465_s12, %s506_s14  ;;  %s25_s16 = sadd.s32 1, %s461_s11 }
   0x7   : > { %p23_p0 = scmp.eq.s32.totalorder %s22_s15, 0  ;;  %p32_p1 = scmp.ne.s32.totalorder %s461_s11, %s457_s10 }
   0x8   : > { %p33_p2 = scmp.eq.s32.totalorder %s465_s12, 0  ;;  %p38_p3 = scmp.ne.s32.totalorder %s457_s10, %s453_s9 }
   0x9   : > { %s516_s17 = scalar_select %p23_p0, %s461_s11, %s25_s16  }
   0xa   : > { %p34_p4 = por %p33_p2, %p32_p1  ;;  %p39_p5 = scmp.eq.s32.totalorder %s503_s13, 0 }
   0xb   : > { %p334_p6 = scmp.lt.s32.totalorder %s465_s12, 2  ;;  %s525_s19 = sand.u32 1, %s461_s11  }
   0xc   : > { %p520_p7 = por %p39_p5, %p38_p3  ;;  %s313_s20 = sshll.u32 %s525_s19, 3 }
   0xd   : > { %s314_s21 = sshll.u32 %s465_s12, 7  ;;  %s118_s25 = scalar_lea.vmem [#allocation2], %s313_s20 }
   0xe   : > { %s642_s18 = scalar_select %p520_p7, 1, 0 }
   0xf   : > { %s534_s24 = scalar_lea.hbm %s638_s0, %s314_s21  ;;  %s125_s26 = sshll.u32 %s118_s25, 4  ;;  %s538_s26 = int_to_ptr.vmem [resolvable:$true] %s125_s26 }
  0x10   : > { %p540_p8 = pnand %p334_p6, %p34_p4  ;;  %s115_s28 = scalar_lea.sflag [#allocation3], %s525_s19 }
  0x11   : > { %s367_s29 = scalar_lea.hbm %s534_s24, 128  ;;  %s372_s4 = scalar_lea.hbm %s638_s0, 256 }
  0x12   : > { %p368_p11 = scmp.ne.s32.totalorder %s534_s24, %s367_s29  ;;  %p369_p12 = pneg %p540_p8 }
  0x13   : > { %p373_p1 = scmp.lt.u32.totalorder %s534_s24, %s638_s0  ;;  %p374_p2 = scmp.lt.u32.totalorder %s372_s4, %s367_s29 }
  0x14   : > { %p370_p13 = pnand %p369_p12, %p368_p11  ;;  %p376_p4 = scmp.lt.u32.totalorder %s367_s29, %s534_s24 }
  0x15   : > { %p375_p3 = por %p374_p2, %p373_p1 }
  0x16   : > { %p371_p0 = pneg %p370_p13 }
  0x17   : > { %p377_p5 = por %p376_p4, %p375_p3 }
  0x19   : > { %p378_p6 = pnand %p377_p5, %p371_p0 }
  0x1b   : > { %381 = shalt.err (!%p378_p6)
}
  0x1c   : > { %s382_s7 = scalar_lea.vmem %s538_s26, 128  ;;  %s467_s8 = smov [#allocation2]  }
  0x1d   : > { %p383_p11 = scmp.ne.s32.totalorder %s538_s26, %s382_s7  ;;  %s387_s9 = sshll.u32 %s467_s8, 4  ;;  %s388_s9 = int_to_ptr.vmem [resolvable:$false] %s387_s9 }
  0x1e   : > { %s389_s15 = scalar_lea.vmem %s388_s9, 256  ;;  %p390_p10 = scmp.lt.s32.totalorder %s538_s26, %s388_s9 }
  0x1f   : > { %p385_p13 = pnand %p383_p11, %p369_p12  ;;  %p391_p1 = scmp.lt.s32.totalorder %s389_s15, %s382_s7 }
  0x21   : > { %p386_p9 = pneg %p385_p13  ;;  %p392_p2 = por %p391_p1, %p390_p10 }
  0x23   : > { %p393_p3 = pnand %p392_p2, %p386_p9 }
  0x25   : > { %396 = shalt.err (!%p393_p3)
}
  0x26   : > { %330 = dma.hbm_to_vmem [thread:$0]  (!%p540_p8), %s534_s24, 128, %s538_s26, %s115_s28  }
  0x27   : > { %p644_p0 = scmp.lt.s32.totalorder %s465_s12, 3  ;;  %p645_p4 = scmp.ge.s32.totalorder %s465_s12, 1 }
  0x28   : > { %s585_s25 = scalar_lea.hbm %s639_s1, %s314_s21  ;;  %s136_s29 = scalar_lea.vmem [#allocation4], %s313_s20 }
  0x29   : > { %p576_p5 = pnand %p645_p4, %p644_p0  ;;  %s143_s30 = sshll.u32 %s136_s29, 4  ;;  %s144_s30 = int_to_ptr.vmem [resolvable:$true] %s143_s30 }
  0x2a   : > { %s133_s24 = scalar_lea.sflag [#allocation5], %s525_s19  ;;  %s397_s26 = scalar_lea.hbm %s585_s25, 128 }
  0x2b   : > { %s646_s16 = scalar_select %p576_p5, 1, 0 }
  0x2c   : > { %p398_p9 = scmp.ne.s32.totalorder %s585_s25, %s397_s26  ;;  %s402_s21 = scalar_lea.hbm %s639_s1, 256 }
  0x2d   : > { %p403_p11 = scmp.lt.u32.totalorder %s585_s25, %s639_s1  ;;  %p404_p13 = scmp.lt.u32.totalorder %s402_s21, %s397_s26 }
  0x2e   : > { %p400_p10 = pnand %p398_p9, %p369_p12  ;;  %p406_p2 = scmp.lt.u32.totalorder %s397_s26, %s585_s25 }
  0x2f   : > { %p405_p1 = por %p404_p13, %p403_p11 }
  0x30   : > { %p401_p6 = pneg %p400_p10 }
  0x31   : > { %p407_p3 = por %p406_p2, %p405_p1 }
  0x33   : > { %p408_p0 = pnand %p407_p3, %p401_p6 }
  0x35   : > { %411 = shalt.err (!%p408_p0)
}
  0x36   : > { %s412_s19 = scalar_lea.vmem %s144_s30, 128  ;;  %s468_s20 = smov [#allocation4]  }
  0x37   : > { %p413_p4 = scmp.ne.s32.totalorder %s144_s30, %s412_s19  ;;  %s417_s5 = sshll.u32 %s468_s20, 4  ;;  %s418_s5 = int_to_ptr.vmem [resolvable:$false] %s417_s5 }
  0x38   : > { %s419_s6 = scalar_lea.vmem %s418_s5, 256  ;;  %p420_p7 = scmp.lt.s32.totalorder %s144_s30, %s418_s5 }
  0x39   : > { %p415_p9 = pnand %p413_p4, %p369_p12  ;;  %p421_p5 = scmp.lt.s32.totalorder %s419_s6, %s412_s19 }
  0x3b   : > { %p416_p10 = pneg %p415_p9  ;;  %p422_p11 = por %p421_p5, %p420_p7 }
  0x3d   : > { %p423_p13 = pnand %p422_p11, %p416_p10 }
  0x3f   : > { %426 = shalt.err (!%p423_p13)
}
  0x40   : > { %333 = dma.hbm_to_vmem [thread:$0]  (!%p540_p8), %s585_s25, 128, %s144_s30, %s133_s24  }
  0x41   : > { %p647_p6 = scmp.ne.s32.totalorder %s646_s16, 0 }
  0x42   : > { %s154_s7 = sand.u32 (!%p647_p6), 1, %s457_s10   ;;  %p648_p12 = scmp.ne.s32.totalorder (!%p647_p6), %s642_s18, 0 }
  0x43   : > { %152 = sbr.rel (%p647_p6) target bundleno = 94 (0x5e), region = 28  ;;  %s318_s8 = sshll.u32 (!%p647_p6), %s154_s7, 3 }
  0x44   : > { %s155_s9 = scalar_lea.sflag (!%p647_p6), [#allocation3], %s154_s7  ;;  %s158_s15 = scalar_lea.vmem (!%p647_p6), [#allocation2], %s318_s8 }
  0x4a   : > { %444 = dma.done.wait (%p648_p12), %s155_s9, 128  }
  0x4b   : > { %446 = vsyncadd (%p648_p12), %s155_s9, 4294967168  ;;  %s164_s22 = scalar_lea.sflag [#allocation5], %s154_s7  ;;  %s167_s23 = scalar_lea.vmem [#allocation4], %s318_s8 }
  0x4c   : > { %448 = dma.done.wait (%p648_p12), %s164_s22, 128  }
  0x4d   : > { %450 = vsyncadd (%p648_p12), %s164_s22, 4294967168  ;;  %v196_v0 = vld [vmem:[%s158_s15] sm:$0xff]  ;;  %v197_v1 = vld [vmem:[%s167_s23] sm:$0xff]  ;;  %p192_p7 = scmp.lt.s32.totalorder %s503_s13, 1 }
  0x4e   : > { %v198_v2 = vmul.f32 %v196_v0, %v196_v0  ;;  %v206_v3 = vmul.f32 %v197_v1, %v197_v1  ;;  %v214_v4 = vmul.f32 %v197_v1, %v196_v0 }
  0x4f   : > { %s654_s13 = smov (!%p192_p7, %s503_s13), 1 }
  0x50   : > { %v199_v5 = vrot.slane %v198_v2, 4  ;;  %v207_v6 = vrot.slane %v206_v3, 4  ;;  %v215_v7 = vrot.slane %v214_v4, 4  ;;  %s320_s18 = sshll.u32 %s654_s13, 2 }
  0x51   : > { %s195_s25 = scalar_lea.vmem %s640_s2, %s320_s18 }
  0x52   : > { %v200_v8 = vadd.f32 %v199_v5, %v198_v2  ;;  %v208_v9 = vadd.f32 %v207_v6, %v206_v3  ;;  %v216_v10 = vadd.f32 %v215_v7, %v214_v4 }
  0x54   : > { %v201_v11 = vrot.slane %v200_v8, 2  ;;  %v209_v12 = vrot.slane %v208_v9, 2  ;;  %v217_v13 = vrot.slane %v216_v10, 2 }
  0x56   : > { %v202_v14 = vadd.f32 %v201_v11, %v200_v8  ;;  %v210_v15 = vadd.f32 %v209_v12, %v208_v9  ;;  %v218_v16 = vadd.f32 %v217_v13, %v216_v10 }
  0x58   : > { %v203_v17 = vrot.slane %v202_v14, 1  ;;  %v211_v18 = vrot.slane %v210_v15, 1  ;;  %v219_v19 = vrot.slane %v218_v16, 1 }
  0x5a   : > { %v204_v20 = vadd.f32 %v203_v17, %v202_v14  ;;  %v212_v21 = vadd.f32 %v211_v18, %v210_v15  ;;  %v220_v22 = vadd.f32 %v219_v19, %v218_v16 }
  0x5c   : > { %205 = vst [vmem:[%s195_s25] sm:$0x1] %v204_v20  ;;  %213 = vst [vmem:[%s195_s25 + $0x1] sm:$0x1] %v212_v21 }
  0x5d   : > { %221 = vst [vmem:[%s195_s25 + $0x2] sm:$0x1] %v220_v22 }
  0x5e PF: > { %p15_p8 = scmp.ge.s32.totalorder %s506_s14, 4   ;;  %s649_s9 = smov %s457_s10 }
  0x5f   : > { %s650_s10 = smov %s461_s11  ;;  %s651_s11 = smov %s516_s17 }
  0x60   : > { %s652_s12 = smov %s506_s14  ;;  %17 = sbr.rel (!%p15_p8) target bundleno = 5 (0x5), region = 81 }
  0x67   :  { %241 = vsyncpa [#allocation3], 1 }
  0x68   :  { %243 = vsyncpa [#allocation3 + $0x1], 1 }
  0x69   :  { %244 = vsyncpa [#allocation5], 1 }
  0x6a   :  { %246 = vsyncpa [#allocation5 + $0x1], 1 }

</bundles_post_ra>
